<compile_context>
chip_gen: v6e
topology: v6e:2x2x1
jax: 0.10.0
libtpu: 0.0.40
codegen_flags: <defaults>
</compile_context>

<pallas_src>
import math

import numpy as np
import jax
import jax.numpy as jnp
from jax.experimental import pallas as pl
from jax.experimental.pallas import tpu as pltpu


def _round_up(x, m):
    return ((x + m - 1) // m) * m


_TAIL = 8  # overlap rows appended per time tile (supports n_fft <= (TAIL+1)*hop)


# ------------------------------------------------------------------
# librosa-compatible mel filterbank (htk=False => Slaney scale, norm=1)
# ------------------------------------------------------------------
def _hz_to_mel(f):
    f = np.asarray(f, dtype=np.float64)
    f_sp = 200.0 / 3.0
    mels = f / f_sp
    min_log_hz = 1000.0
    min_log_mel = min_log_hz / f_sp
    logstep = np.log(6.4) / 27.0
    mels = np.where(
        f >= min_log_hz,
        min_log_mel + np.log(np.maximum(f, 1e-10) / min_log_hz) / logstep,
        mels,
    )
    return mels


def _mel_to_hz(m):
    m = np.asarray(m, dtype=np.float64)
    f_sp = 200.0 / 3.0
    freqs = m * f_sp
    min_log_hz = 1000.0
    min_log_mel = min_log_hz / f_sp
    logstep = np.log(6.4) / 27.0
    freqs = np.where(
        m >= min_log_mel,
        min_log_hz * np.exp(logstep * (m - min_log_mel)),
        freqs,
    )
    return freqs


def mel_filterbank(fs, n_fft, n_mels, fmin, fmax):
    n_freq = n_fft // 2 + 1
    fftfreqs = np.linspace(0.0, fs / 2.0, n_freq)
    mel_f = _mel_to_hz(np.linspace(_hz_to_mel(fmin), _hz_to_mel(fmax), n_mels + 2))
    fdiff = np.diff(mel_f)
    ramps = mel_f[:, None] - fftfreqs[None, :]
    lower = -ramps[:-2] / fdiff[:-1, None]
    upper = ramps[2:] / fdiff[1:, None]
    weights = np.maximum(0.0, np.minimum(lower, upper))
    # norm=1 -> Slaney area normalization
    enorm = 2.0 / (mel_f[2 : n_mels + 2] - mel_f[:n_mels])
    weights *= enorm[:, None]
    return weights.astype(np.float32)  # (n_mels, n_freq)


# ------------------------------------------------------------------
# Pallas kernel: in-kernel framing -> packed real-DFT -> power -> mel -> log -> mask
# ------------------------------------------------------------------
def _make_frontend_kernel(hop, n_fft, tile_t):
    n_pieces = -(-n_fft // hop)  # hop-wide column pieces per frame (last may be short)

    def kernel(lens_ref, main_ref, tail_ref, basis_ref, mel_ref, out_ref):
        # main_ref: (TT, hop) f32       tail_ref: (_TAIL, hop) f32
        # basis_ref: (n_fft, F_PACK) bf16   mel_ref: (F_PACK, M_PAD) bf16
        # out_ref:  (TT, M_PAD) bf16
        b = pl.program_id(0)
        t0 = pl.program_id(1) * tile_t
        n_valid = lens_ref[b]

        @pl.when(t0 < n_valid)
        def _compute():
            # hop-sample rows covering this tile's frames (frame t = rows[t:t+n_pieces]).
            rows = jnp.concatenate([main_ref[...], tail_ref[...]], axis=0)
            # Fold the framing into n_pieces accumulated MXU matmuls against
            # row-aligned slices of the window-folded, rfft-packed DFT basis.
            ri = None
            for j in range(n_pieces):
                c0 = j * hop
                w = min(hop, n_fft - c0)
                lhs = rows[j : j + tile_t, :w].astype(jnp.bfloat16)
                part = jnp.dot(
                    lhs, basis_ref[c0 : c0 + w, :],
                    preferred_element_type=jnp.float32,
                )
                ri = part if ri is None else ri + part           # (TT, F_PACK) f32

            # |STFT|^2: cos/sin columns are disjoint, so a single square; the
            # duplicated mel rows sum re^2 + im^2 per bin inside the mel matmul.
            power = ri * ri
            mel = jnp.dot(
                power.astype(mel_ref.dtype), mel_ref[...],
                preferred_element_type=jnp.float32,
            )                                                     # (TT, M_PAD)
            logmel = jnp.log(jnp.maximum(mel, 1e-10))             # clamp(1e-10).log()

            # Per-frame pad mask from scalar-prefetched feats_lens.
            fi = t0 + jax.lax.broadcasted_iota(jnp.int32, out_ref.shape, 0)
            out_ref[...] = jnp.where(fi < n_valid, logmel, 0.0).astype(out_ref.dtype)

        @pl.when(t0 >= n_valid)
        def _skip():                     # fully padded tile: no MXU / EUP work
            out_ref[...] = jnp.zeros_like(out_ref)

    return kernel


def default_frontend(
    signal,
    lengths,
    *,
    fs=16000,
    n_fft=256,
    win_length=200,
    hop_length=80,
    n_mels=80,
    fmin=None,
    fmax=None,
    out_dtype=jnp.bfloat16,   # bf16 halves output HBM traffic; set f32 for parity
):
    """JAX/Pallas equivalent of DefaultFrontend.forward (eval mode)."""
    signal = signal.astype(jnp.float32)
    B, S = signal.shape
    n_freq = n_fft // 2 + 1
    F_PACK = _round_up(2 * n_freq - 2, 128)   # == n_fft when n_fft % 128 == 0
    M_PAD = _round_up(n_mels, 128)            # 80 -> 128: lane-dense output stores
    fmin = 0.0 if fmin is None else float(fmin)
    fmax = fs / 2.0 if fmax is None else float(fmax)

    n_pieces = -(-n_fft // hop_length)
    assert n_pieces - 1 <= _TAIL, "n_fft too large relative to hop for the overlap block"

    # ---- frame/tile geometry (Stft center=True: T = S//hop + 1) ----
    T = 1 + S // hop_length
    TT = min(512, _round_up(T, 16))           # MXU-sized M; keep <=512 for v5e VMEM
    if B * ((T + TT - 1) // TT) < 2:          # v7x: >=2 grid steps so both TCs get work
        TT = max(16, _round_up((T + 1) // 2, 16))
    T_pad = _round_up(T, TT)
    R = T_pad + _TAIL                         # hop-sample rows incl. last tile's overlap

    # ---- reflect pad + free reshape to (B, R, hop): no frames gather duplication ----
    pad = n_fft // 2
    x_pad = jnp.pad(signal, ((0, 0), (pad, pad)), mode="reflect")
    need = R * hop_length
    cur = x_pad.shape[1]
    if cur < need:
        x_pad = jnp.pad(x_pad, ((0, 0), (0, need - cur)))
    elif cur > need:
        x_pad = x_pad[:, :need]
    rows = x_pad.reshape(B, R, hop_length)    # row r = samples [r*hop, (r+1)*hop)

    # ---- window-folded, rfft-packed DFT basis: [cos k=0..F-1 | sin k=1..F-2] ----
    n = np.arange(win_length, dtype=np.float64)
    hann = 0.5 * (1.0 - np.cos(2.0 * np.pi * n / win_length))     # torch.hann_window
    lpad = (n_fft - win_length) // 2
    window = np.zeros(n_fft, dtype=np.float64)
    window[lpad : lpad + win_length] = hann
    nn = np.arange(n_fft, dtype=np.float64)[:, None]
    kc = np.arange(n_freq, dtype=np.float64)[None, :]
    ks = np.arange(1, n_freq - 1, dtype=np.float64)[None, :]
    basis_np = np.zeros((n_fft, F_PACK), dtype=np.float32)
    basis_np[:, :n_freq] = window[:, None] * np.cos(2.0 * np.pi * nn * kc / n_fft)
    basis_np[:, n_freq : 2 * n_freq - 2] = (
        -window[:, None] * np.sin(2.0 * np.pi * nn * ks / n_fft)
    )

    # ---- mel matrix with duplicated rows for the sin columns (bins 1..F-2) ----
    melw = mel_filterbank(fs, n_fft, n_mels, fmin, fmax)          # (n_mels, n_freq)
    melmat_np = np.zeros((F_PACK, M_PAD), dtype=np.float32)
    melmat_np[:n_freq, :n_mels] = melw.T
    melmat_np[n_freq : 2 * n_freq - 2, :n_mels] = melw.T[1 : n_freq - 1]

    basis = jnp.asarray(basis_np, dtype=jnp.bfloat16)             # (n_fft, F_PACK)
    melmat = jnp.asarray(melmat_np, dtype=jnp.bfloat16)           # (F_PACK, M_PAD)

    # ---- frame lengths (Stft center=True: lens // hop + 1) ----
    feats_lens = (lengths // hop_length + 1).astype(jnp.int32)    # (B,)

    grid = (B, T_pad // TT)
    tail_blocks_per_tile = TT // _TAIL
    k_total = n_pieces * hop_length
    flops = 2 * B * T_pad * (k_total * F_PACK + F_PACK * M_PAD)
    bytes_accessed = (
        B * R * hop_length * 4                                    # signal rows (f32)
        + n_fft * F_PACK * 2                                      # packed DFT basis (bf16)
        + F_PACK * M_PAD * 2                                      # mel matrix (bf16)
        + B * T_pad * M_PAD * jnp.dtype(out_dtype).itemsize       # output
    )

    out = pl.pallas_call(
        _make_frontend_kernel(hop_length, n_fft, TT),
        out_shape=jax.ShapeDtypeStruct((B, T_pad, M_PAD), out_dtype),
        grid_spec=pltpu.PrefetchScalarGridSpec(
            num_scalar_prefetch=1,                                # feats_lens -> SMEM
            grid=grid,
            in_specs=[
                # main tile rows [t*TT, (t+1)*TT)
                pl.BlockSpec((None, TT, hop_length), lambda b, t, lens: (b, t, 0)),
                # 8-row overlap block starting at row (t+1)*TT (same array, 2nd view)
                pl.BlockSpec(
                    (None, _TAIL, hop_length),
                    lambda b, t, lens: (b, (t + 1) * tail_blocks_per_tile, 0),
                ),
                pl.BlockSpec((n_fft, F_PACK), lambda b, t, lens: (0, 0)),
                pl.BlockSpec((F_PACK, M_PAD), lambda b, t, lens: (0, 0)),
            ],
            out_specs=pl.BlockSpec((None, TT, M_PAD), lambda b, t, lens: (b, t, 0)),
        ),
        compiler_params=pltpu.CompilerParams(
            dimension_semantics=("parallel", "parallel"),
        ),
        cost_estimate=pl.CostEstimate(
            flops=flops,
            transcendentals=B * T_pad * M_PAD,
            bytes_accessed=bytes_accessed,
        ),
    )(feats_lens, rows, rows, basis, melmat)

    # TODO(synk): fuse this crop into the consumer (keeping the 128-lane mel pad for
    # downstream matmuls) to avoid materializing the sliced copy.
    input_feats = out[:, :T, :n_mels]
    # downsample_rate == 1 -> no extra time padding branch; frontend_conf=None -> no WPE/MVDR.
    return input_feats, feats_lens


if __name__ == "__main__":
    key = jax.random.PRNGKey(0)
    B = 2
    hop = 80
    S = 1280  # 16 hops -> T = 17 frames
    signal = jax.random.normal(key, (B, S), dtype=jnp.float32)
    lengths = jnp.array([1280, 1000], dtype=jnp.int32)

    feats, feats_lens = default_frontend(
        signal,
        lengths,
        fs=16000,
        n_fft=256,
        win_length=200,
        hop_length=hop,
        n_mels=80,
    )
    jax.block_until_ready(feats)
    jax.block_until_ready(feats_lens)

    assert feats.shape == (B, 1 + S // hop, 80), feats.shape
    assert feats_lens.shape == (B,), feats_lens.shape
    # padded frames (t >= feats_lens) must be zero-masked
    assert bool(jnp.all(feats[1, int(feats_lens[1]) :, :] == 0.0))
    print("KERNEL_OK")
</pallas_src>

<mosaic_0001>
module attributes {stable_mosaic.version = 11 : i64} {
  func.func @kernel(%arg0: i32, %arg1: i32, %arg2: memref<2xi32, #tpu.memory_space<smem>>, %arg3: memref<1x32x80xf32, #tpu.memory_space<vmem>>, %arg4: memref<1x8x80xf32, #tpu.memory_space<vmem>>, %arg5: memref<256x256xbf16, #tpu.memory_space<vmem>>, %arg6: memref<256x128xbf16, #tpu.memory_space<vmem>>, %arg7: memref<1x32x128xbf16, #tpu.memory_space<vmem>>) attributes {dimension_semantics = [#tpu.dimension_semantics<parallel>, #tpu.dimension_semantics<parallel>], iteration_bounds = array<i64: 2, 1>, scalar_prefetch = 1 : i64, scratch_operands = 0 : i64, tpu.core_type = #tpu.core_type<tc>, window_params = [{transform_indices = @transform_0, window_bounds = array<i64: 1, 32, 80>}, {transform_indices = @transform_1, window_bounds = array<i64: 1, 8, 80>}, {pipeline_mode = #tpu.pipeline_mode<synchronous>, transform_indices = @transform_2, window_bounds = array<i64: 256, 256>}, {pipeline_mode = #tpu.pipeline_mode<synchronous>, transform_indices = @transform_3, window_bounds = array<i64: 256, 128>}, {transform_indices = @transform_4, window_bounds = array<i64: 1, 32, 128>}]} {
    %c32_i32 = arith.constant 32 : i32
    %0 = arith.muli %arg1, %c32_i32 : i32
    %1 = arith.index_cast %arg0 : i32 to index
    %2 = memref.load %arg2[%1] : memref<2xi32, #tpu.memory_space<smem>>
    %3 = arith.cmpi slt, %0, %2 : i32
    %4 = arith.extui %3 : i1 to i32
    %c0_i32 = arith.constant 0 : i32
    %5 = arith.cmpi ne, %4, %c0_i32 : i32
    scf.if %5 {
      %c0 = arith.constant 0 : index
      %c0_1 = arith.constant 0 : index
      %c0_2 = arith.constant 0 : index
      %9 = vector.load %arg3[%c0, %c0_1, %c0_2] : memref<1x32x80xf32, #tpu.memory_space<vmem>>, vector<1x32x80xf32>
      %10 = vector.shape_cast %9 : vector<1x32x80xf32> to vector<32x80xf32>
      %c0_3 = arith.constant 0 : index
      %c0_4 = arith.constant 0 : index
      %c0_5 = arith.constant 0 : index
      %11 = vector.load %arg4[%c0_3, %c0_4, %c0_5] : memref<1x8x80xf32, #tpu.memory_space<vmem>>, vector<1x8x80xf32>
      %12 = vector.shape_cast %11 : vector<1x8x80xf32> to vector<8x80xf32>
      %13 = tpu.concatenate %10, %12 in 0 : vector<32x80xf32>, vector<8x80xf32> -> vector<40x80xf32>
      %14 = vector.extract_strided_slice %13 {offsets = [0, 0], sizes = [32, 80], strides = [1, 1]} : vector<40x80xf32> to vector<32x80xf32>
      %15 = arith.truncf %14 : vector<32x80xf32> to vector<32x80xbf16>
      %c0_6 = arith.constant 0 : index
      %c0_7 = arith.constant 0 : index
      %16 = vector.load %arg5[%c0_6, %c0_7] : memref<256x256xbf16, #tpu.memory_space<vmem>>, vector<80x256xbf16>
      %cst = arith.constant dense<0.000000e+00> : vector<32x256xf32>
      %17 = tpu.matmul %15, %16, %cst {dimension_numbers = #tpu.dot_dimension_numbers<[1], [0], [0], [1], [0, 0, 1, 1], [], []>} : vector<32x80xbf16>, vector<80x256xbf16>, vector<32x256xf32> -> vector<32x256xf32>
      %18 = vector.extract_strided_slice %13 {offsets = [1, 0], sizes = [32, 80], strides = [1, 1]} : vector<40x80xf32> to vector<32x80xf32>
      %19 = arith.truncf %18 : vector<32x80xf32> to vector<32x80xbf16>
      %c80 = arith.constant 80 : index
      %c0_8 = arith.constant 0 : index
      %20 = vector.load %arg5[%c80, %c0_8] : memref<256x256xbf16, #tpu.memory_space<vmem>>, vector<80x256xbf16>
      %cst_9 = arith.constant dense<0.000000e+00> : vector<32x256xf32>
      %21 = tpu.matmul %19, %20, %cst_9 {dimension_numbers = #tpu.dot_dimension_numbers<[1], [0], [0], [1], [0, 0, 1, 1], [], []>} : vector<32x80xbf16>, vector<80x256xbf16>, vector<32x256xf32> -> vector<32x256xf32>
      %22 = arith.addf %17, %21 : vector<32x256xf32>
      %23 = vector.extract_strided_slice %13 {offsets = [2, 0], sizes = [32, 80], strides = [1, 1]} : vector<40x80xf32> to vector<32x80xf32>
      %24 = arith.truncf %23 : vector<32x80xf32> to vector<32x80xbf16>
      %c160 = arith.constant 160 : index
      %c0_10 = arith.constant 0 : index
      %25 = vector.load %arg5[%c160, %c0_10] : memref<256x256xbf16, #tpu.memory_space<vmem>>, vector<80x256xbf16>
      %cst_11 = arith.constant dense<0.000000e+00> : vector<32x256xf32>
      %26 = tpu.matmul %24, %25, %cst_11 {dimension_numbers = #tpu.dot_dimension_numbers<[1], [0], [0], [1], [0, 0, 1, 1], [], []>} : vector<32x80xbf16>, vector<80x256xbf16>, vector<32x256xf32> -> vector<32x256xf32>
      %27 = arith.addf %22, %26 : vector<32x256xf32>
      %28 = vector.extract_strided_slice %13 {offsets = [3, 0], sizes = [32, 16], strides = [1, 1]} : vector<40x80xf32> to vector<32x16xf32>
      %29 = arith.truncf %28 : vector<32x16xf32> to vector<32x16xbf16>
      %c240 = arith.constant 240 : index
      %c0_12 = arith.constant 0 : index
      %30 = vector.load %arg5[%c240, %c0_12] : memref<256x256xbf16, #tpu.memory_space<vmem>>, vector<16x256xbf16>
      %cst_13 = arith.constant dense<0.000000e+00> : vector<32x256xf32>
      %31 = tpu.matmul %29, %30, %cst_13 {dimension_numbers = #tpu.dot_dimension_numbers<[1], [0], [0], [1], [0, 0, 1, 1], [], []>} : vector<32x16xbf16>, vector<16x256xbf16>, vector<32x256xf32> -> vector<32x256xf32>
      %32 = arith.addf %27, %31 : vector<32x256xf32>
      %33 = arith.mulf %32, %32 : vector<32x256xf32>
      %34 = arith.truncf %33 : vector<32x256xf32> to vector<32x256xbf16>
      %c0_14 = arith.constant 0 : index
      %c0_15 = arith.constant 0 : index
      %35 = vector.load %arg6[%c0_14, %c0_15] : memref<256x128xbf16, #tpu.memory_space<vmem>>, vector<256x128xbf16>
      %cst_16 = arith.constant dense<0.000000e+00> : vector<32x128xf32>
      %36 = tpu.matmul %34, %35, %cst_16 {dimension_numbers = #tpu.dot_dimension_numbers<[1], [0], [0], [1], [0, 0, 1, 1], [], []>} : vector<32x256xbf16>, vector<256x128xbf16>, vector<32x128xf32> -> vector<32x128xf32>
      %cst_17 = arith.constant 1.000000e-10 : f32
      %37 = vector.broadcast %cst_17 : f32 to vector<32x128xf32>
      %38 = arith.maximumf %36, %37 : vector<32x128xf32>
      %39 = math.log %38 : vector<32x128xf32>
      %40 = tpu.iota {dimensions = array<i32: 0>} : vector<32x128xi32>
      %41 = vector.broadcast %0 : i32 to vector<32x128xi32>
      %42 = arith.addi %41, %40 : vector<32x128xi32>
      %43 = vector.broadcast %2 : i32 to vector<32x128xi32>
      %44 = arith.cmpi slt, %42, %43 : vector<32x128xi32>
      %cst_18 = arith.constant 0.000000e+00 : f32
      %45 = vector.broadcast %cst_18 : f32 to vector<32x128xf32>
      %46 = arith.select %44, %39, %45 : vector<32x128xi1>, vector<32x128xf32>
      %47 = arith.truncf %46 : vector<32x128xf32> to vector<32x128xbf16>
      %c0_19 = arith.constant 0 : index
      %c0_20 = arith.constant 0 : index
      %c0_21 = arith.constant 0 : index
      %48 = vector.load %arg7[%c0_19, %c0_20, %c0_21] : memref<1x32x128xbf16, #tpu.memory_space<vmem>>, vector<1x32x128xbf16>
      %49 = vector.shape_cast %48 : vector<1x32x128xbf16> to vector<32x128xbf16>
      %50 = vector.shape_cast %47 : vector<32x128xbf16> to vector<1x32x128xbf16>
      tpu.vector_store %arg7[%c0_19, %c0_20, %c0_21], %50 {strides = array<i32>} : memref<1x32x128xbf16, #tpu.memory_space<vmem>>, vector<1x32x128xbf16>,
    } else {
    }
    %6 = arith.cmpi sge, %0, %2 : i32
    %7 = arith.extui %6 : i1 to i32
    %c0_i32_0 = arith.constant 0 : i32
    %8 = arith.cmpi ne, %7, %c0_i32_0 : i32
    scf.if %8 {
      %cst = arith.constant 0.000000e+00 : bf16
      %9 = vector.broadcast %cst : bf16 to vector<32x128xbf16>
      %c0 = arith.constant 0 : index
      %c0_1 = arith.constant 0 : index
      %c0_2 = arith.constant 0 : index
      %10 = vector.load %arg7[%c0, %c0_1, %c0_2] : memref<1x32x128xbf16, #tpu.memory_space<vmem>>, vector<1x32x128xbf16>
      %11 = vector.shape_cast %10 : vector<1x32x128xbf16> to vector<32x128xbf16>
      %12 = vector.shape_cast %9 : vector<32x128xbf16> to vector<1x32x128xbf16>
      tpu.vector_store %arg7[%c0, %c0_1, %c0_2], %12 {strides = array<i32>} : memref<1x32x128xbf16, #tpu.memory_space<vmem>>, vector<1x32x128xbf16>,
    } else {
    }
    return
  }
  func.func @transform_0(%arg0: i32, %arg1: i32, %arg2: memref<2xi32, #tpu.memory_space<smem>>) -> (i32, i32, i32) {
    %c0_i32 = arith.constant 0 : i32
    %c0_i32_0 = arith.constant 0 : i32
    return %arg0, %arg1, %c0_i32 : i32, i32, i32
  }
  func.func @transform_1(%arg0: i32, %arg1: i32, %arg2: memref<2xi32, #tpu.memory_space<smem>>) -> (i32, i32, i32) {
    %c1_i32 = arith.constant 1 : i32
    %0 = arith.addi %arg1, %c1_i32 : i32
    %c4_i32 = arith.constant 4 : i32
    %1 = arith.muli %0, %c4_i32 : i32
    %c0_i32 = arith.constant 0 : i32
    %c0_i32_0 = arith.constant 0 : i32
    return %arg0, %1, %c0_i32 : i32, i32, i32
  }
  func.func @transform_2(%arg0: i32, %arg1: i32, %arg2: memref<2xi32, #tpu.memory_space<smem>>) -> (i32, i32) {
    %c0_i32 = arith.constant 0 : i32
    %c0_i32_0 = arith.constant 0 : i32
    %c0_i32_1 = arith.constant 0 : i32
    return %c0_i32, %c0_i32_0 : i32, i32
  }
  func.func @transform_3(%arg0: i32, %arg1: i32, %arg2: memref<2xi32, #tpu.memory_space<smem>>) -> (i32, i32) {
    %c0_i32 = arith.constant 0 : i32
    %c0_i32_0 = arith.constant 0 : i32
    %c0_i32_1 = arith.constant 0 : i32
    return %c0_i32, %c0_i32_0 : i32, i32
  }
  func.func @transform_4(%arg0: i32, %arg1: i32, %arg2: memref<2xi32, #tpu.memory_space<smem>>) -> (i32, i32, i32) {
    %c0_i32 = arith.constant 0 : i32
    %c0_i32_0 = arith.constant 0 : i32
    return %arg0, %arg1, %c0_i32 : i32, i32, i32
  }
}

</mosaic_0001>

<bundles_post_ra>
// kernel: tpu_custom_call.1
= control target key start
LH: loop header
LB: loop body
LE: loop exit
PB: predicated region body
PF: predicated region fallthrough
CT: control target
= control target key end

     0   :  { %s1741_s18 = smov [#allocation3]   ;;  %s2063_s0 = inlined_call_operand.hbm [shape: s32[2], index: 0, kind: input, shape index: {}]   ;;  %s2064_s1 = inlined_call_operand.hbm [shape: f32[2,40,80], index: 1, kind: input, shape index: {}]   ;;  %s2065_s2 = inlined_call_operand.hbm [shape: f32[2,40,80], index: 2, kind: input, shape index: {}]   ;;  %s2066_s3 = inlined_call_operand.hbm [shape: bf16[256,256], index: 3, kind: input, shape index: {}]   ;;  %s2067_s4 = inlined_call_operand.hbm [shape: bf16[256,128], index: 4, kind: input, shape index: {}]   ;;  %s2068_s5 = inlined_call_operand.hbm [shape: bf16[2,32,128], index: 5, kind: output, shape index: {}]  }
   0x1   :  { %2073 = sst [smem:[#allocation23_spill]] %s2064_s1 }
   0x2   :  { %2074 = sst [smem:[#allocation24_spill]] %s2066_s3 }
   0x3   :  { %2075 = sst [smem:[#allocation25_spill]] %s2067_s4 }
   0x4   :  { %11 = dma.hbm_to_smem %s2063_s0, 16, %s1741_s18, [#allocation2] }
   0x5   :  { %1695 = dma.done.wait [#allocation2], 16 }
   0x6   :  { %1696 = vsyncadd [#allocation2], 4294967280 }
   0x7   :  { %13 = sfence }
   0x8   :  { %14 = vsyncpa [#allocation5], 0 }
   0x9   :  { %16 = vsyncpa [#allocation5 + $0x1], 0 }
   0xa   :  { %17 = vsyncpa [#allocation8], 0 }
   0xb   :  { %19 = vsyncpa [#allocation8 + $0x1], 0 }
   0xc   :  { %20 = vsyncpa [#allocation11], 0 }
   0xd   :  { %21 = vsyncpa [#allocation6], 0 }
   0xe   :  { %23 = vsyncpa [#allocation6 + $0x1], 0  ;;  %s1788_s21 = smov 0   ;;  %s1790_s22 = smov 0  }
   0xf   :  { %s1792_s23 = smov 0   ;;  %s1794_s24 = smov 0  }
  0x10   :  { %s1796_s25 = smov 0   ;;  %s1798_s0 = smov 0  }
  0x11 LB: > { %2076 = sst [smem:[#allocation19_spill]] %s1727_s23  ;;  %s1819_s26 = sadd.s32 4294967295, %s1739_s0   ;;  %s1739_s0 = sphi %s1798_s0, %s29_s0   ;;  %s1735_s25 = sphi %s1796_s25, %s2094_s25   ;;  %s1731_s24 = sphi %s1794_s24, %s2093_s24   ;;  %s1727_s23 = sphi %s1792_s23, %s2092_s23   ;;  %s1723_s22 = sphi %s1790_s22, %s2096_s22   ;;  %s1719_s21 = sphi %s1788_s21, %s2095_s21  }
  0x12   : > { %2077 = sst [smem:[#allocation20_spill]] %s1735_s25  ;;  %s1230_s27 = sadd.s32 4294967294, %s1739_s0  }
  0x13   : > { %p63_p0 = scmp.ne.s32.totalorder %s1723_s22, %s1719_s21  ;;  %p64_p1 = scmp.eq.s32.totalorder %s1819_s26, 0 }
  0x14   : > { %p163_p2 = scmp.eq.s32.totalorder %s1819_s26, 1  ;;  %p169_p3 = scmp.eq.s32.totalorder %s1230_s27, 1 }
  0x15   : > { %p1828_p4 = por %p64_p1, %p63_p0  ;;  %p1231_p5 = scmp.ge.s32.totalorder %s1739_s0, 1 }
  0x16   : > { %p1833_p6 = por %p169_p3, %p63_p0  ;;  %p176_p7 = scmp.lt.s32.totalorder %s1739_s0, 3 }
  0x17   : > { %s1742_s6 = smov [#allocation9]   ;;  %s1743_s9 = smov [#allocation10]  }
  0x18   : > { %p1838_p8 = pnand %p1231_p5, %p176_p7  ;;  %s188_s7 = sshll.u32 %s1742_s6, 4  ;;  %s189_s7 = int_to_ptr.vmem [resolvable:$true] %s188_s7 }
  0x19   : > { %s201_s10 = sshll.u32 %s1743_s9, 4  ;;  %s1547_s11 = scalar_lea.vmem %s189_s7, 4096  ;;  %s202_s10 = int_to_ptr.vmem [resolvable:$true] %s201_s10 }
  0x1a   : > { %p1373_p9 = pneg %p1838_p8  ;;  %p1548_p13 = scmp.ne.s32.totalorder %s189_s7, %s1547_s11 }
  0x1b   : > { %p1555_p5 = scmp.lt.s32.totalorder %s189_s7, %s189_s7  ;;  %p1556_p7 = scmp.lt.s32.totalorder %s1547_s11, %s1547_s11 }
  0x1c   : > { %p1847_p11 = pnand %p1373_p9, %p64_p1 }
  0x1d   : > { %p1557_p10 = por %p1556_p7, %p1555_p5 }
  0x1e   : > { %p1538_p12 = pneg %p1847_p11 }
  0x20   : > { %p1550_p0 = pnand %p1548_p13, %p1538_p12 }
  0x22   : > { %p1551_p3 = pneg %p1550_p0 }
  0x24   : > { %p1558_p9 = pnand %p1557_p10, %p1551_p3 }
  0x26   : > { %1561 = shalt.err (!%p1558_p9)
}
  0x27   : > { %s2069_s12 = smov 128   ;;  %s1745_s13 = smov 8  }
  0x28   : > { %s2082_s3 = sld [smem:[#allocation24_spill]]  ;;  %s1573_s16 = scalar_lea.vmem %s202_s10, 2048 }
  0x29   : > { %p1574_p13 = scmp.ne.s32.totalorder %s202_s10, %s1573_s16  ;;  %p1581_p10 = scmp.lt.s32.totalorder %s202_s10, %s202_s10 }
  0x2a   : > { %p1582_p3 = scmp.lt.s32.totalorder %s1573_s16, %s1573_s16 }
  0x2b   : > { %p1576_p0 = pnand %p1574_p13, %p1538_p12 }
  0x2c   : > { %p1583_p7 = por %p1582_p3, %p1581_p10 }
  0x2d   : > { %p1577_p5 = pneg %p1576_p0 }
  0x2e   : > { %1376 = dma.hbm_to_vmem [thread:$0]  (!%p1847_p11), %s2082_s3, 4096, %s189_s7, [#allocation8], %s2069_s12, %s2069_s12, %s1745_s13  }
  0x2f   : > { %p1584_p9 = pnand %p1583_p7, %p1577_p5 }
  0x31   : > { %1587 = shalt.err (!%p1584_p9)
}
  0x32   : > { %s1746_s17 = smov 64   ;;  %s1747_s18 = smov 4  }
  0x33   : > { %s2083_s4 = sld [smem:[#allocation25_spill]]  ;;  %s41_s27 = sadd.s32 1, %s1735_s25 }
  0x34   : > { %s50_s6 = sadd.s32 1, %s1727_s23  ;;  %p43_p12 = scmp.ge.s32.totalorder %s41_s27, 2 }
  0x35   : > { %p57_p13 = scmp.ne.s32.totalorder %s1727_s23, %s1723_s22  ;;  %p58_p0 = scmp.eq.s32.totalorder %s1739_s0, 0 }
  0x36   : > { %p1393_p5 = scmp.lt.s32.totalorder %s1739_s0, 2  ;;  %s2098_s27 = smov (%p43_p12, %s41_s27), 0 }
  0x37   : > { %2084 = sst [smem:[#allocation21_spill]] %s2098_s27  ;;  %p59_p10 = por %p58_p0, %p57_p13 }
  0x38   : > { %p1882_p3 = por %p163_p2, %p57_p13  ;;  %s45_s8 = ssub.s32 %s1735_s25, %s2098_s27 }
  0x39   : > { %1379 = dma.hbm_to_vmem [thread:$0]  (!%p1847_p11), %s2083_s4, 2048, %s202_s10, [#allocation11], %s1746_s17, %s1746_s17, %s1747_s18  }
  0x3a   : > { %s1889_s9 = sand.u32 1, %s1727_s23   ;;  %p48_p11 = scmp.eq.s32.totalorder %s45_s8, 0 }
  0x3b   : > { %s1235_s10 = sshll.u32 %s1889_s9, 5  ;;  %s1358_s11 = smul.u32 640, %s1735_s25 }
  0x3c   : > { %s1894_s14 = scalar_select %p48_p11, %s1727_s23, %s50_s6  }
  0x3d   : > { %s2087_s1 = sld [smem:[#allocation23_spill]]  ;;  %s219_s18 = scalar_lea.vmem [#allocation4], %s1235_s10 }
  0x3e   : > { %2086 = sst [smem:[#allocation22_spill]] %s1894_s14  ;;  %s234_s19 = sshll.u32 %s219_s18, 4  ;;  %s235_s19 = int_to_ptr.vmem [resolvable:$true] %s234_s19 }
  0x3f   : > { %p1901_p2 = pnand %p1393_p5, %p59_p10  ;;  %s244_s12 = sand.u32 1, %s1739_s0  }
  0x40   : > { %s216_s8 = scalar_lea.sflag [#allocation5], %s1889_s9  ;;  %s1601_s6 = scalar_lea.vmem %s235_s19, 512 }
  0x41   : > { %p1590_p7 = pneg %p1901_p2  ;;  %p1602_p9 = scmp.ne.s32.totalorder %s235_s19, %s1601_s6 }
  0x42   : > { %s1748_s10 = smov [#allocation4]  }
  0x43   : > { %s232_s17 = scalar_lea.hbm %s2087_s1, %s1358_s11  ;;  %p1604_p12 = pnand %p1602_p9, %p1590_p7 }
  0x44   : > { %s1606_s15 = sshll.u32 %s1748_s10, 4  ;;  %s1607_s15 = int_to_ptr.vmem [resolvable:$false] %s1606_s15 }
  0x45   : > { %p1605_p13 = pneg %p1604_p12  ;;  %s1608_s16 = scalar_lea.vmem %s1607_s15, 1024 }
  0x46   : > { %p1609_p0 = scmp.lt.s32.totalorder %s235_s19, %s1607_s15  ;;  %p1610_p5 = scmp.lt.s32.totalorder %s1608_s16, %s1601_s6 }
  0x48   : > { %p1611_p10 = por %p1610_p5, %p1609_p0 }
  0x4a   : > { %p1612_p11 = pnand %p1611_p10, %p1605_p13 }
  0x4c   : > { %1615 = shalt.err (!%p1612_p11)
}
  0x4d   : > { %s2089_s18 = smov 128   ;;  %s1237_s1 = sshll.u32 %s1889_s9, 3 }
  0x4e   : > { %1383 = dma.hbm_to_vmem [thread:$0]  (!%p1901_p2), %s232_s17, 512, %s235_s19, %s216_s8, %s2089_s18, %s2089_s18, %s1745_s13  }
  0x4f   : > { %s1142_s10 = scalar_lea.hbm %s2065_s2, %s1358_s11  ;;  %s248_s25 = scalar_lea.vmem [#allocation7], %s1237_s1 }
  0x50   : > { %s1143_s27 = scalar_lea.hbm %s1142_s10, 512  ;;  %s259_s15 = sshll.u32 %s248_s25, 4  ;;  %s260_s15 = int_to_ptr.vmem [resolvable:$true] %s259_s15 }
  0x51   : > { %s245_s6 = scalar_lea.sflag [#allocation8], %s244_s12  ;;  %s1629_s16 = scalar_lea.vmem %s260_s15, 128 }
  0x52   : > { %p1630_p9 = scmp.ne.s32.totalorder %s260_s15, %s1629_s16  ;;  %s1749_s14 = smov [#allocation7]  }
  0x53   : > { %s1634_s23 = sshll.u32 %s1749_s14, 4  ;;  %s1635_s23 = int_to_ptr.vmem [resolvable:$false] %s1634_s23 }
  0x54   : > { %p1632_p12 = pnand %p1630_p9, %p1590_p7  ;;  %s1636_s13 = scalar_lea.vmem %s1635_s23, 256 }
  0x55   : > { %p1637_p0 = scmp.lt.s32.totalorder %s260_s15, %s1635_s23  ;;  %p1638_p5 = scmp.lt.s32.totalorder %s1636_s13, %s1629_s16 }
  0x56   : > { %p1633_p13 = pneg %p1632_p12 }
  0x57   : > { %p1639_p10 = por %p1638_p5, %p1637_p0 }
  0x59   : > { %p1640_p11 = pnand %p1639_p10, %p1633_p13 }
  0x5b   : > { %1643 = shalt.err (!%p1640_p11)
}
  0x5c   : > { %1386 = dma.hbm_to_vmem [thread:$0]  (!%p1901_p2), %s1143_s27, 128, %s260_s15, %s245_s6  }
  0x5d   : > { %268 = sbr.rel (%p1838_p8) target bundleno = 648 (0x288), region = 36  ;;  %s1929_s1 = sand.u32 (!%p1838_p8), 1, %s1723_s22  }
  0x5e   : > { %s1240_s3 = sshll.u32 (!%p1838_p8), %s1929_s1, 5  ;;  %s271_s4 = scalar_lea.sflag (!%p1838_p8), [#allocation5], %s1929_s1 }
  0x5f   : > { %s1933_s25 = scalar_lea.vmem (!%p1838_p8), [#allocation4], %s1240_s3 }
  0x62   : > { %1698 = dma.done.wait (%p1828_p4), %s271_s4, 512  }
  0x63   : > { %1700 = vsyncadd (%p1828_p4), %s271_s4, 4294966784  ;;  %s279_s23 = sand.u32 1, %s1819_s26   ;;  %s1241_s30 = sshll.u32 %s1929_s1, 3 }
  0x64   : > { %s280_s12 = scalar_lea.sflag [#allocation8], %s279_s23  ;;  %s1941_s27 = scalar_lea.vmem [#allocation7], %s1241_s30 }
  0x65   : > { %1702 = dma.done.wait (%p1828_p4), %s280_s12, 128  }
  0x66   : > { %1704 = vsyncadd (%p1828_p4), %s280_s12, 4294967168 }
  0x67   : > { %1706 = dma.done.wait (%p64_p1), [#allocation8], 4096  }
  0x68   : > { %1708 = vsyncadd (%p64_p1), [#allocation8], 4294963200 }
  0x69   : > { %1710 = dma.done.wait (%p64_p1), [#allocation11], 2048  }
  0x6a   : > { %1712 = vsyncadd (%p64_p1), [#allocation11], 4294965248  ;;  %s1244_s9 = sshll.u32 %s1929_s1, 4  ;;  %s1957_s11 = sld [smem:[#allocation3 + %s1731_s24]] }
  0x6b   : > { %s1959_s14 = scalar_lea.vmem [#allocation12], %s1244_s9 }
  0x70   : > { %p1246_p4 = scmp.le.s32.totalorder %s1957_s11, 0 }
  0x72   : > { %335 = sbr.rel (%p1246_p4) target bundleno = 614 (0x266), region = 56 }
  0x77   : > { %v1456_v0 = vld [vmem:[#allocation9 + $0x94] ss:$8 sps:$4 sm:$0xff]   ;;  %v1458_v1 = vld [vmem:[#allocation9 + $0x44] ss:$8 sps:$4 sm:$0xff]   ;;  %v1750_v2 = vmov 0   ;;  %vm435_vm1 = vcmask 654336  }
  0x78   : > { %474 = vmatprep.mubr.bf16.mxu0 %v1750_v2  ;;  %581 = vmatprep.mubr.bf16.mxu1 %v1750_v2  ;;  %v1460_v3 = vld [vmem:[#allocation9 + $0x90] ss:$8 sps:$4 sm:$0xff]   ;;  %v1461_v4 = vld [vmem:[#allocation9 + $0x40] ss:$8 sps:$4 sm:$0xff]   ;;  %v1462_v5 = vld [vmem:[#allocation9 + $0x84] ss:$8 sps:$4 sm:$0xff]  }
  0x79   : > { %448 = vmatprep.subr.bf16.mxu0 %v1456_v0  ;;  %555 = vmatprep.subr.bf16.mxu1 %v1458_v1  ;;  %v1464_v6 = vld [vmem:[#allocation9 + $0x34] ss:$8 sps:$4 sm:$0xff]   ;;  %v1466_v7 = vld [vmem:[#allocation9 + $0x80] ss:$8 sps:$4 sm:$0xff]   ;;  %v1467_v8 = vld [vmem:[#allocation9 + $0x30] ss:$8 sps:$4 sm:$0xff]  }
  0x7a   : > { %449 = vmatpush1.bf16.msra.mxu0 %v1460_v3  ;;  %556 = vmatpush1.bf16.msra.mxu1 %v1461_v4  ;;  %v1468_v9 = vld [vmem:[#allocation9 + $0x74] ss:$8 sps:$4 sm:$0xff]   ;;  %v1470_v10 = vld [vmem:[#allocation9 + $0x24] ss:$8 sps:$4 sm:$0xff]   ;;  %v1472_v11 = vld [vmem:[#allocation9 + $0x70] ss:$8 sps:$4 sm:$0xff]  }
  0x7b   : > { %450 = vmatprep.subr.bf16.mxu0 %v1462_v5  ;;  %557 = vmatprep.subr.bf16.mxu1 %v1464_v6  ;;  %v1473_v12 = vld [vmem:[#allocation9 + $0x20] ss:$8 sps:$4 sm:$0xff]   ;;  %v1474_v13 = vld [vmem:[#allocation9 + $0x64] ss:$8 sps:$4 sm:$0xff]   ;;  %v1476_v14 = vld [vmem:[#allocation9 + $0x14] ss:$8 sps:$4 sm:$0xff]  }
  0x7c   : > { %v1478_v15 = vld [vmem:[#allocation9 + $0x60] ss:$8 sps:$4 sm:$0xff]   ;;  %v1479_v16 = vld [vmem:[#allocation9 + $0x10] ss:$8 sps:$4 sm:$0xff]   ;;  %v1480_v17 = vld [vmem:[#allocation9 + $0x54] ss:$8 sps:$4 sm:$0xff]  }
  0x7d   : > { %v1482_v18 = vld [vmem:[#allocation9 + $0x4] ss:$8 sps:$4 sm:$0xff]   ;;  %v336_v19 = vld [vmem:[%s1933_s25] sm:$0xff]  ;;  %v337_v20 = vld [vmem:[%s1933_s25 + $0x8] sm:$0xff]  ;;  %vm364_vm0 = vsmask.f32 7424 }
  0x7e   : > { %451 = vmatpush1.bf16.msra.mxu0 %v1466_v7  ;;  %558 = vmatpush1.bf16.msra.mxu1 %v1467_v8  ;;  %v338_v21 = vld [vmem:[%s1933_s25 + $0x10] sm:$0xff]  ;;  %v339_v22 = vld [vmem:[%s1933_s25 + $0x18] sm:$0xff]  ;;  %v1968_v23 = vpack.c.bf16 %v337_v20, %v336_v19  ;;  %v1484_v24 = vld [vmem:[#allocation9 + $0x50] ss:$8 sps:$4 sm:$0xff]   ;;  %vm615_vm2 = vcmask 1046528   ;;  %vm764_vm4 = vcmask 130048  }
  0x7f   : > { %452 = vmatprep.subr.bf16.mxu0 %v1468_v9  ;;  %559 = vmatprep.subr.bf16.mxu1 %v1470_v10  ;;  %v1970_v25 = vpack.c.bf16 %v339_v22, %v338_v21  ;;  %v1485_v26 = vld [vmem:[#allocation9] ss:$8 sps:$4 sm:$0xff]   ;;  %v1488_v30 = vld [vmem:[#allocation9 + $0xe4] ss:$8 sps:$4 sm:$0xff]   ;;  %v340_v31 = vld [vmem:[%s1941_s27] sm:$0xff] }
  0x80   : > { %v366_v27 = vshrl.u32 %v1968_v23, 16  ;;  %v368_v28 = vshll.u32 %v1968_v23, 16  ;;  %v1976_v33 = vpack.c.bf16 %v340_v31, %v340_v31  ;;  %v1486_v36 = vld [vmem:[#allocation9 + $0xe0] ss:$8 sps:$4 sm:$0xff]   ;;  %v1491_v39 = vld [vmem:[#allocation9 + $0xd4] ss:$8 sps:$4 sm:$0xff]  }
  0x81   : > { %v373_v29 = vshll.u32 %v1970_v25, 16  ;;  %v377_v37 = vshrl.u32 %v1970_v25, 16  ;;  %v1489_v41 = vld [vmem:[#allocation9 + $0xd0] ss:$8 sps:$4 sm:$0xff]   ;;  %v1494_v44 = vld [vmem:[#allocation9 + $0xc4] ss:$8 sps:$4 sm:$0xff]  }
  0x82   : > { %453 = vmatpush1.bf16.msra.mxu0 %v1472_v11  ;;  %560 = vmatpush1.bf16.msra.mxu1 %v1473_v12  ;;  %v370_v32 = vrot.slane %v368_v28, 1  ;;  %v381_v38 = vshll.u32 %v1976_v33, 16  ;;  %v1492_v45 = vld [vmem:[#allocation9 + $0xc0] ss:$8 sps:$4 sm:$0xff]   ;;  %v1497_v46 = vld [vmem:[#allocation9 + $0xb4] ss:$8 sps:$4 sm:$0xff]  }
  0x83   : > { %454 = vmatprep.subr.bf16.mxu0 %v1474_v13  ;;  %561 = vmatprep.subr.bf16.mxu1 %v1476_v14  ;;  %v375_v34 = vrot.slane %v373_v29, 1  ;;  %v1495_v48 = vld [vmem:[#allocation9 + $0xb0] ss:$8 sps:$4 sm:$0xff]   ;;  %v1500_v49 = vld [vmem:[#allocation9 + $0xa4] ss:$8 sps:$4 sm:$0xff]   ;;  %v616_v51 = vrot.slane %v1968_v23, 1 }
  0x84   : > { %v371_v35 = vor.u32 %v370_v32, %v366_v27  ;;  %v383_v42 = vrot.slane %v381_v38, 1  ;;  %v1498_v50 = vld [vmem:[#allocation9 + $0xa0] ss:$8 sps:$4 sm:$0xff]   ;;  %v617_v52 = vrot.slane %v1970_v25, 1  ;;  %v1503_v53 = vld [vmem:[#allocation9 + $0xf4] ss:$8 sps:$4 sm:$0xff]  }
  0x85   : > { %v379_v43 = vor.u32 %v377_v37, %v375_v34  ;;  %v1501_v55 = vld [vmem:[#allocation9 + $0xf0] ss:$8 sps:$4 sm:$0xff]   ;;  %v619_v56 = vrot.slane %v1976_v33, 1  ;;  %v741_v57 = vrot.slane %v366_v27, 1  ;;  %v742_v58 = vrot.slane %v368_v28, 2  ;;  %v1508_v11 = vld [vmem:[#allocation10 + $0x68] sm:$0xff]  }
  0x86   : > { %455 = vmatpush1.bf16.msra.mxu0 %v1478_v15  ;;  %562 = vmatpush1.bf16.msra.mxu1 %v1479_v16  ;;  %v376_v40 = vsel %vm364_vm0, %v371_v35, %v375_v34  ;;  %v618_v54 = vsel %vm615_vm2, %v616_v51, %v617_v52  ;;  %v745_v59 = vrot.slane %v373_v29, 2  ;;  %v744_v60 = vrot.slane %v377_v37, 1  ;;  %v1504_v7 = vld [vmem:[#allocation10 + $0x78] sm:$0xff]   ;;  %v1506_v9 = vld [vmem:[#allocation10 + $0x70] sm:$0xff]   ;;  %v1509_v12 = vld [vmem:[#allocation10 + $0x28] sm:$0xff]  }
  0x87   : > { %456 = vmatprep.subr.bf16.mxu0 %v1480_v17  ;;  %563 = vmatprep.subr.bf16.mxu1 %v1482_v18  ;;  %v384_v47 = vsel %vm364_vm0, %v379_v43, %v383_v42  ;;  %v620_v61 = vsel %vm615_vm2, %v617_v52, %v619_v56  ;;  %v743_v62 = vor.u32 %v742_v58, %v741_v57  ;;  %v748_v0 = vshrl.u32 %v1976_v33, 16  ;;  %v1505_v8 = vld [vmem:[#allocation10 + $0x38] sm:$0xff]   ;;  %v1507_v10 = vld [vmem:[#allocation10 + $0x30] sm:$0xff]   ;;  %v1510_v13 = vld [vmem:[#allocation10 + $0x60] sm:$0xff]  }
  0x88   : > { %v746_v63 = vor.u32 %v745_v59, %v744_v60  ;;  %vm740_vm3 = vsmask.f32 6400  ;;  %v751_v4 = vrot.slane %v381_v38, 2  ;;  %v1511_v14 = vld [vmem:[#allocation10 + $0x20] sm:$0xff]   ;;  %v1513_v15 = vld [vmem:[#allocation10 + $0x18] sm:$0xff]   ;;  %v1514_v16 = vld [vmem:[#allocation10 + $0x50] sm:$0xff]  }
  0x89   : > { %v750_v3 = vrot.slane %v748_v0, 1  ;;  %v1515_v17 = vld [vmem:[#allocation10 + $0x10] sm:$0xff]   ;;  %v1516_v18 = vld [vmem:[#allocation10 + $0x48] sm:$0xff]   ;;  %v1518_v20 = vld [vmem:[#allocation10 + $0x40] sm:$0xff]  }
  0x8a   : > { %457 = vmatpush1.bf16.msra.mxu0 %v1484_v24  ;;  %564 = vmatpush1.bf16.msra.mxu1 %v1485_v26  ;;  %v747_v1 = vsel %vm740_vm3, %v743_v62, %v746_v63  ;;  %v1517_v19 = vld [vmem:[#allocation10 + $0x8] sm:$0xff]   ;;  %v1519_v21 = vld [vmem:[#allocation10] sm:$0xff]  }
  0x8b   : > { %683 = vmatprep.subr.bf16.mxu0 %v1488_v30  ;;  %v752_v5 = vor.u32 %v751_v4, %v750_v3  ;;  %1330 = vmatprep.subr.bf16.mxu1 %v1504_v7 }
  0x8d   : > { %1257 = vmatmul.mubr.msk.bf16.vlgmr.msra.gmra.mxu0 %vm435_vm1, %v376_v40  ;;  %1269 = vmatmul.mubr.msk.bf16.vlgmr.msra.gmra.mxu1 %vm435_vm1, %v1968_v23  ;;  %v753_v6 = vsel %vm740_vm3, %v746_v63, %v752_v5 }
  0x8e   : > { %684 = vmatpush1.bf16.msra.mxu0 %v1486_v36  ;;  %484 = vmatprep.mubr.bf16.mxu0 %v1750_v2 }
  0x8f   : > { %685 = vmatprep.subr.bf16.mxu0 %v1491_v39  ;;  %591 = vmatprep.mubr.bf16.mxu1 %v1750_v2 }
  0x90   : > { %1331 = vmatpush3.bf16.msra.mxu1 %v1505_v8 }
  0x91   : > { %1332 = vmatprep.subr.bf16.mxu1 %v1506_v9 }
  0x92   : > { %686 = vmatpush1.bf16.msra.mxu0 %v1489_v41 }
  0x93   : > { %687 = vmatprep.subr.bf16.mxu0 %v1494_v44 }
  0x94   : > { %1333 = vmatpush3.bf16.msra.mxu1 %v1507_v10 }
  0x95   : > { %1258 = vmatmul.mubr.msk.bf16.gmra.mxu0 %vm435_vm1, %v384_v47  ;;  %1270 = vmatmul.mubr.msk.bf16.gmra.mxu1 %vm435_vm1, %v1970_v25 }
  0x96   : > { %688 = vmatpush1.bf16.msra.mxu0 %v1492_v45  ;;  %709 = vmatprep.mubr.bf16.mxu0 %v1750_v2 }
  0x97   : > { %689 = vmatprep.subr.bf16.mxu0 %v1497_v46  ;;  %1334 = vmatprep.subr.bf16.mxu1 %v1508_v11 }
  0x98   : > { %1335 = vmatpush3.bf16.msra.mxu1 %v1509_v12 }
  0x99   : > { %1336 = vmatprep.subr.bf16.mxu1 %v1510_v13 }
  0x9a   : > { %690 = vmatpush1.bf16.msra.mxu0 %v1495_v48 }
  0x9b   : > { %691 = vmatprep.subr.bf16.mxu0 %v1500_v49 }
  0x9c   : > { %1337 = vmatpush3.bf16.msra.mxu1 %v1511_v14 }
  0x9e   : > { %692 = vmatpush1.bf16.msra.mxu0 %v1498_v50 }
  0x9f   : > { %785 = vmatprep.subr.bf16.mxu0 %v1503_v53 }
  0xa1   : > { %1281 = vmatmul.mubr.msk.bf16.vlgmr.msra.gmra.mxu0 %vm435_vm1, %v618_v54 }
  0xa2   : > { %786 = vmatpush1.bf16.msra.mxu0 %v1501_v55  ;;  %719 = vmatprep.mubr.bf16.mxu0 %v1750_v2 }
  0xa9   : > { %1282 = vmatmul.mubr.msk.bf16.gmra.mxu0 %vm435_vm1, %v620_v61 }
  0xaa   : > { %803 = vmatprep.mubr.bf16.mxu0 %v1750_v2 }
  0xb1   : > { %1285 = vmatmul.mubr.msk.bf16.vlgmr.msra.gmra.mxu0 %vm764_vm4, %v747_v1 }
  0xb2   : > { %813 = vmatprep.mubr.bf16.mxu0 %v1750_v2  ;;  %v1512_v2 = vld [vmem:[#allocation10 + $0x58] sm:$0xff]  }
  0xb3   : > { %1338 = vmatprep.subr.bf16.mxu1 %v1512_v2 }
  0xb4   : > { %1339 = vmatpush3.bf16.msra.mxu1 %v1513_v15 }
  0xb5   : > { %1340 = vmatprep.subr.bf16.mxu1 %v1514_v16 }
  0xb8   : > { %1341 = vmatpush3.bf16.msra.mxu1 %v1515_v17 }
  0xb9   : > { %1286 = vmatmul.mubr.msk.bf16.gmra.mxu0 %vm764_vm4, %v753_v6  ;;  %1342 = vmatprep.subr.bf16.mxu1 %v1516_v18 }
  0xbc   : > { %1343 = vmatpush3.bf16.msra.mxu1 %v1517_v19 }
  0xbd   : > { %1344 = vmatprep.subr.bf16.mxu1 %v1518_v20 }
  0xc0   : > { %1345 = vmatpush3.bf16.msra.mxu1 %v1519_v21 }
 0x14d   : > { %v476_v22 = vpop.f32.mrf.mxu0  ;;  %v583_v29 = vpop.f32.mrf.mxu1 }
 0x14e   : > { %v584_v47 = vadd.f32 %v583_v29, %v476_v22 }
 0x14f   : > { %v478_v23 = vpop.f32.mrf.mxu0  ;;  %v585_v31 = vpop.f32.mrf.mxu1 }
 0x150   : > { %v586_v45 = vadd.f32 %v585_v31, %v478_v23 }
 0x151   : > { %v480_v24 = vpop.f32.mrf.mxu0  ;;  %v587_v34 = vpop.f32.mrf.mxu1 }
 0x152   : > { %v588_v46 = vadd.f32 %v587_v34, %v480_v24 }
 0x153   : > { %v482_v25 = vpop.f32.mrf.mxu0  ;;  %v589_v37 = vpop.f32.mrf.mxu1 }
 0x154   : > { %v590_v49 = vadd.f32 %v589_v37, %v482_v25 }
 0x155   : > { %v486_v26 = vpop.f32.mrf.mxu0  ;;  %v593_v40 = vpop.f32.mrf.mxu1 }
 0x156   : > { %v594_v5 = vadd.f32 %v593_v40, %v486_v26 }
 0x157   : > { %v488_v27 = vpop.f32.mrf.mxu0  ;;  %v595_v43 = vpop.f32.mrf.mxu1 }
 0x158   : > { %v596_v0 = vadd.f32 %v595_v43, %v488_v27 }
 0x159   : > { %v490_v28 = vpop.f32.mrf.mxu0  ;;  %v597_v52 = vpop.f32.mrf.mxu1 }
 0x15a   : > { %v598_v1 = vadd.f32 %v597_v52, %v490_v28 }
 0x15b   : > { %v492_v30 = vpop.f32.mrf.mxu0  ;;  %v599_v61 = vpop.f32.mrf.mxu1 }
 0x15c   : > { %v600_v8 = vadd.f32 %v599_v61, %v492_v30 }
 0x161   : > { %v711_v32 = vpop.f32.mrf.mxu0 }
 0x162   : > { %v730_v53 = vadd.f32 %v711_v32, %v584_v47 }
 0x163   : > { %v713_v33 = vpop.f32.mrf.mxu0 }
 0x164   : > { %v731_v50 = vadd.f32 %v713_v33, %v586_v45 }
 0x165   : > { %v715_v35 = vpop.f32.mrf.mxu0 }
 0x166   : > { %v732_v51 = vadd.f32 %v715_v35, %v588_v46  ;;  %v1043_v46 = vstv %s1957_s11 }
 0x167   : > { %v717_v36 = vpop.f32.mrf.mxu0 }
 0x168   : > { %v733_v55 = vadd.f32 %v717_v36, %v590_v49 }
 0x169   : > { %v721_v38 = vpop.f32.mrf.mxu0 }
 0x16a   : > { %v734_v12 = vadd.f32 %v721_v38, %v594_v5 }
 0x16b   : > { %v723_v39 = vpop.f32.mrf.mxu0 }
 0x16c   : > { %v735_v9 = vadd.f32 %v723_v39, %v596_v0  ;;  %v1033_v39 = vlaneseq }
 0x16d   : > { %v725_v41 = vpop.f32.mrf.mxu0 }
 0x16e   : > { %v736_v10 = vadd.f32 %v725_v41, %v598_v1  ;;  %v1034_v43 = vshrl.u32 %v1033_v39, 7 }
 0x16f   : > { %v727_v42 = vpop.f32.mrf.mxu0 }
 0x170   : > { %v737_v2 = vadd.f32 %v727_v42, %v600_v8  ;;  %v1035_v45 = vadd.s32 8, %v1034_v43  ;;  %vm1044_vm5 = vcmp.lt.s32.totalorder %v1034_v43, %v1043_v46 }
 0x171   : > { %v805_v44 = vpop.f32.mrf.mxu0 }
 0x172   : > { %v824_v58 = vadd.f32 %v805_v44, %v730_v53  ;;  %vm1045_vm6 = vcmp.lt.s32.totalorder %v1035_v45, %v1043_v46 }
 0x173   : > { %v807_v48 = vpop.f32.mrf.mxu0 }
 0x174   : > { %v825_v56 = vadd.f32 %v807_v48, %v731_v50  ;;  %v832_v6 = vmul.f32 %v824_v58, %v824_v58 }
 0x175   : > { %v809_v54 = vpop.f32.mrf.mxu0 }
 0x176   : > { %v826_v57 = vadd.f32 %v809_v54, %v732_v51  ;;  %v833_v3 = vmul.f32 %v825_v56, %v825_v56  ;;  %v1036_v54 = vadd.s32 16, %v1034_v43 }
 0x177   : > { %v811_v59 = vpop.f32.mrf.mxu0 }
 0x178   : > { %v827_v60 = vadd.f32 %v811_v59, %v733_v55  ;;  %v834_v62 = vmul.f32 %v826_v57, %v826_v57  ;;  %v1037_v55 = vadd.s32 24, %v1034_v43  ;;  %vm1046_vm7 = vcmp.lt.s32.totalorder %v1036_v54, %v1043_v46 }
 0x179   : > { %v815_v63 = vpop.f32.mrf.mxu0 }
 0x17a   : > { %v835_v4 = vmul.f32 %v827_v60, %v827_v60  ;;  %v840_v13 = vpack.c.bf16 %v834_v62, %v832_v6  ;;  %v828_v17 = vadd.f32 %v815_v63, %v734_v12  ;;  %vm1047_vm8 = vcmp.lt.s32.totalorder %v1037_v55, %v1043_v46 }
 0x17b   : > { %v817_v7 = vpop.f32.mrf.mxu0 }
 0x17c   : > { %v841_v11 = vpack.c.bf16 %v835_v4, %v833_v3  ;;  %v829_v15 = vadd.f32 %v817_v7, %v735_v9  ;;  %v836_v23 = vmul.f32 %v828_v17, %v828_v17 }
 0x17d   : > { %v819_v14 = vpop.f32.mrf.mxu0 }
 0x17e   : > { %v830_v16 = vadd.f32 %v819_v14, %v736_v10  ;;  %1004 = vmatprep.mubr.bf16.mxu1 %v841_v11  ;;  %v837_v21 = vmul.f32 %v829_v15, %v829_v15 }
 0x17f   : > { %v821_v18 = vpop.f32.mrf.mxu0  ;;  %1005 = vmatmul.mubr.bf16.vlgmr.msra.gmra.mxu1 %v840_v13 }
 0x180   : > { %v831_v19 = vadd.f32 %v821_v18, %v737_v2  ;;  %v838_v20 = vmul.f32 %v830_v16, %v830_v16 }
 0x182   : > { %v839_v22 = vmul.f32 %v831_v19, %v831_v19  ;;  %v842_v25 = vpack.c.bf16 %v838_v20, %v836_v23 }
 0x184   : > { %v843_v24 = vpack.c.bf16 %v839_v22, %v837_v21 }
 0x186   : > { %1012 = vmatprep.mubr.bf16.mxu1 %v843_v24 }
 0x187   : > { %1013 = vmatmul.mubr.bf16.gmra.mxu1 %v842_v25 }
 0x23f   : > { %v1346_v26 = vpop.f32.mrf.mxu1 }
 0x241   : > { %v1347_v27 = vpop.f32.mrf.mxu1 }
 0x242   : > { %v1348_v28 = vadd.f32 %v1347_v27, %v1346_v26 }
 0x243   : > { %v1349_v29 = vpop.f32.mrf.mxu1 }
 0x244   : > { %v1021_v30 = vmax.f32 %v1348_v28, 1e-10 }
 0x245   : > { %v1350_v31 = vpop.f32.mrf.mxu1 }
 0x246   : > { %1520 = vlog2.f32 %v1021_v30  ;;  %v1351_v32 = vadd.f32 %v1350_v31, %v1349_v29 }
 0x247   : > { %v1352_v33 = vpop.f32.mrf.mxu1 }
 0x248   : > { %v1022_v34 = vmax.f32 %v1351_v32, 1e-10 }
 0x249   : > { %v1353_v35 = vpop.f32.mrf.mxu1 }
 0x24a   : > { %1522 = vlog2.f32 %v1022_v34  ;;  %v1354_v36 = vadd.f32 %v1353_v35, %v1352_v33 }
 0x24b   : > { %v1355_v37 = vpop.f32.mrf.mxu1 }
 0x24c   : > { %v1023_v38 = vmax.f32 %v1354_v36, 1e-10 }
 0x24d   : > { %v1356_v40 = vpop.f32.mrf.mxu1 }
 0x24e   : > { %1524 = vlog2.f32 %v1023_v38  ;;  %v1357_v41 = vadd.f32 %v1356_v40, %v1355_v37 }
 0x250   : > { %v1024_v42 = vmax.f32 %v1357_v41, 1e-10 }
 0x252   : > { %1526 = vlog2.f32 %v1024_v42 }
 0x253   : > { %v1521_v44 = vpop.eup %1520 }
 0x254   : > { %v1026_v47 = vmul.f32 0.6931472, %v1521_v44 }
 0x256   : > { %v1048_v50 = vsel %vm1044_vm5, %v1026_v47, 0.0 }
 0x257   : > { %v1523_v48 = vpop.eup %1522 }
 0x258   : > { %v1028_v49 = vmul.f32 0.6931472, %v1523_v48 }
 0x25a   : > { %v1049_v51 = vsel %vm1045_vm6, %v1028_v49, 0.0 }
 0x25b   : > { %v1525_v52 = vpop.eup %1524  ;;  %v1322_v53 = vpack.c.bf16 %v1049_v51, %v1048_v50 }
 0x25c   : > { %v1030_v56 = vmul.f32 0.6931472, %v1525_v52 }
 0x25d   : > { %1323 = vst [vmem:[%s1959_s14] sm:$0xff] %v1322_v53  }
 0x25e   : > { %v1050_v59 = vsel %vm1046_vm7, %v1030_v56, 0.0 }
 0x25f   : > { %v1527_v57 = vpop.eup %1526 }
 0x260   : > { %v1032_v58 = vmul.f32 0.6931472, %v1527_v57 }
 0x262   : > { %v1051_v60 = vsel %vm1047_vm8, %v1032_v58, 0.0 }
 0x263   : > { %v1327_v61 = vpack.c.bf16 %v1051_v60, %v1050_v59 }
 0x265   : > { %1329 = vst [vmem:[%s1959_s14 + $0x8] sm:$0xff] %v1327_v61  }
 0x266 PF: > { %p1308_p1 = scmp.gt.s32.totalorder %s1957_s11, 0 }
 0x268   : > { %1075 = sbr.rel (%p1308_p1) target bundleno = 624 (0x270), region = 60 }
 0x26d   : > { %v1751_v62 = vmov 0  }
 0x26e   : > { %1076 = vst [vmem:[%s1959_s14] sm:$0xf] %v1751_v62  ;;  %1077 = vst [vmem:[%s1959_s14 + $0x4] sm:$0xf] %v1751_v62 }
 0x26f   : > { %1078 = vst [vmem:[%s1959_s14 + $0x8] sm:$0xf] %v1751_v62  ;;  %1079 = vst [vmem:[%s1959_s14 + $0xc] sm:$0xf] %v1751_v62 }
 0x270 PF: > { %s1318_s26 = sshll.u32 %s1731_s24, 8  ;;  %s1096_s20 = sshll.u32 %s1959_s14, 4  ;;  %s2015_s20 = int_to_ptr.vmem [resolvable:$true] %s1096_s20 }
 0x271   : > { %s2012_s19 = scalar_lea.hbm %s2068_s5, %s1318_s26  ;;  %s1081_s8 = scalar_lea.sflag [#allocation6], %s1929_s1 }
 0x272   : > { %s1645_s18 = scalar_lea.vmem %s2015_s20, 256  ;;  %s1752_s10 = smov [#allocation12]  }
 0x273   : > { %p1646_p8 = scmp.ne.s32.totalorder %s2015_s20, %s1645_s18  ;;  %s1649_s15 = sshll.u32 %s1752_s10, 4  ;;  %s1650_s15 = int_to_ptr.vmem [resolvable:$false] %s1649_s15 }
 0x274   : > { %s1651_s24 = scalar_lea.vmem %s1650_s15, 512  ;;  %p1652_p9 = scmp.lt.s32.totalorder %s2015_s20, %s1650_s15 }
 0x275   : > { %p1647_p2 = pnand %p1646_p8, %p1882_p3  ;;  %p1653_p12 = scmp.lt.s32.totalorder %s1651_s24, %s1645_s18 }
 0x277   : > { %p1648_p7 = pneg %p1647_p2  ;;  %p1654_p13 = por %p1653_p12, %p1652_p9 }
 0x279   : > { %p1655_p0 = pnand %p1654_p13, %p1648_p7 }
 0x27b   : > { %1658 = shalt.err (!%p1655_p0)
}
 0x27c   : > { %s1659_s6 = scalar_lea.hbm %s2012_s19, 256  ;;  %s1663_s3 = scalar_lea.hbm %s2068_s5, 512 }
 0x27d   : > { %p1660_p5 = scmp.ne.s32.totalorder %s2012_s19, %s1659_s6  ;;  %p1664_p4 = scmp.lt.s32.totalorder %s2012_s19, %s2068_s5 }
 0x27e   : > { %p1665_p1 = scmp.lt.s32.totalorder %s1663_s3, %s1659_s6 }
 0x27f   : > { %p1661_p10 = pnand %p1660_p5, %p1882_p3 }
 0x280   : > { %p1666_p8 = por %p1665_p1, %p1664_p4 }
 0x281   : > { %p1662_p11 = pneg %p1661_p10 }
 0x283   : > { %p1667_p2 = pnand %p1666_p8, %p1662_p11 }
 0x285   : > { %1670 = shalt.err (!%p1667_p2)
}
 0x286   : > { %s1753_s23 = smov 64   ;;  %s1754_s30 = smov 4  }
 0x287   : > { %1371 = dma.vmem_to_hbm [thread:$0]  (%p1882_p3), %s2015_s20, 256, %s2012_s19, %s1081_s8, %s1753_s23, %s1753_s23, %s1754_s30  }
 0x288 PF: > { %s1111_s12 = sand.u32 1, %s1719_s21   ;;  %p2090_p7 = scmp.ge.s32.totalorder %s1739_s0, 2 }
 0x289   : > { %s1112_s27 = scalar_lea.sflag [#allocation6], %s1111_s12 }
 0x28a   : > { %p1388_p9 = pnand %p2090_p7, %p1833_p6 }
 0x28c   : > { %p1389_p12 = pneg %p1388_p9 }
 0x28e   : > { %1714 = dma.done.wait (%p1389_p12), %s1112_s27, 256  }
 0x28f   : > { %1716 = vsyncadd (%p1389_p12), %s1112_s27, 4294967040  ;;  %s29_s0 = sadd.s32 1, %s1739_s0   ;;  %s2091_s9 = sld [smem:[#allocation19_spill]] }
 0x290   : > { %p26_p13 = scmp.ge.s32.totalorder %s29_s0, 4   ;;  %s2092_s23 = sld [smem:[#allocation22_spill]] }
 0x291   : > { %s2093_s24 = sld [smem:[#allocation20_spill]]  ;;  %s2095_s21 = smov %s1723_s22 }
 0x292   : > { %s2094_s25 = sld [smem:[#allocation21_spill]]  ;;  %28 = sbr.rel (!%p26_p13) target bundleno = 17 (0x11), region = 110 }
 0x295   : > { %s2096_s22 = smov %s2091_s9 }
 0x297   :  { %1117 = vsyncpa [#allocation5], 1 }
 0x298   :  { %1119 = vsyncpa [#allocation5 + $0x1], 1 }
 0x299   :  { %1120 = vsyncpa [#allocation8], 1 }
 0x29a   :  { %1122 = vsyncpa [#allocation8 + $0x1], 1 }
 0x29b   :  { %1123 = vsyncpa [#allocation11], 1 }
 0x29c   :  { %1124 = vsyncpa [#allocation6], 1 }
 0x29d   :  { %1126 = vsyncpa [#allocation6 + $0x1], 1 }

</bundles_post_ra>
